<compile_context>
chip_gen: v6e
topology: v6e:2x2x1
jax: 0.10.0
libtpu: 0.0.40
codegen_flags: <defaults>
</compile_context>

<pallas_src>
import jax
import jax.numpy as jnp
from jax.experimental import pallas as pl
from jax.experimental.pallas import tpu as pltpu


def ffn_kernel(x_ref, w1_ref, b1_ref, w2_ref, b2_ref, o_ref):
    # Matmul 1 on the MXU: bf16 operands, f32 accumulation.
    h = jnp.dot(x_ref[...], w1_ref[...], preferred_element_type=jnp.float32)
    h = h + b1_ref[...]
    # GELU (tanh approximation, matches nn.GELU(approximate='tanh'); within
    # ~3e-3 of the exact erf form) computed in f32 on the VPU/EUP.
    c = 0.7978845608028654  # sqrt(2/pi)
    h = 0.5 * h * (1.0 + jnp.tanh(c * (h + 0.044715 * h * h * h)))
    # Matmul 2: cast activations back to bf16 for the MXU, accumulate in f32.
    y = jnp.dot(h.astype(w2_ref.dtype), w2_ref[...],
                preferred_element_type=jnp.float32)
    y = y + b2_ref[...]
    o_ref[...] = y.astype(o_ref.dtype)


def _pick_tile_m(m):
    # Small row counts: single grid step (kernel is overhead-bound anyway).
    # Large row counts: big sublane-aligned tiles (512-1024 rows) so per-step
    # overhead is amortized and the grid has >= 2 steps for megacore sharding.
    if m <= 1024:
        return m
    for t in (1024, 512, 256, 128):
        if m > t:
            return t
    return m


def feedforward_forward(x, params, *, tile_m=None):
    """x: (..., dim) float32. params: w1 (dim, hidden), b1 (1, hidden),
    w2 (hidden, dim), b2 (1, dim)."""
    *lead, dim = x.shape
    hidden = params["w1"].shape[1]
    x2 = x.reshape(-1, dim)
    m = x2.shape[0]

    # Lane-dense output: pad output features to a multiple of 128 lanes.
    dim_p = ((dim + 127) // 128) * 128
    w2 = params["w2"]
    b2 = params["b2"]
    if dim_p != dim:
        w2 = jnp.pad(w2, ((0, 0), (0, dim_p - dim)))
        b2 = jnp.pad(b2, ((0, 0), (0, dim_p - dim)))

    # bf16 operands for the MXU; biases stay f32 (added to the f32 accumulator).
    x_bf = x2.astype(jnp.bfloat16)
    w1_bf = params["w1"].astype(jnp.bfloat16)
    w2_bf = w2.astype(jnp.bfloat16)
    b1 = params["b1"].astype(jnp.float32)
    b2 = b2.astype(jnp.float32)

    if tile_m is None:
        tile_m = _pick_tile_m(m)
    grid = (pl.cdiv(m, tile_m),)

    out = pl.pallas_call(
        ffn_kernel,
        out_shape=jax.ShapeDtypeStruct((m, dim_p), jnp.float32),
        grid_spec=pltpu.PrefetchScalarGridSpec(
            num_scalar_prefetch=0,
            grid=grid,
            in_specs=[
                # x: tiled over the flattened row axis.
                pl.BlockSpec((tile_m, dim), lambda i: (i, 0)),
                # Weights / biases: full arrays, resident across grid steps.
                pl.BlockSpec((dim, hidden), lambda i: (0, 0)),
                pl.BlockSpec((1, hidden), lambda i: (0, 0)),
                pl.BlockSpec((hidden, dim_p), lambda i: (0, 0)),
                pl.BlockSpec((1, dim_p), lambda i: (0, 0)),
            ],
            out_specs=pl.BlockSpec((tile_m, dim_p), lambda i: (i, 0)),
        ),
        compiler_params=pltpu.CompilerParams(
            dimension_semantics=("parallel",),
        ),
    )(x_bf, w1_bf, b1, w2_bf, b2)

    out = out[:, :dim]
    return out.reshape(*lead, dim).astype(x.dtype)


def init_params(key, dim, hidden_dim):
    """nn.Linear-style init (uniform +/- 1/sqrt(fan_in)); weights stored
    transposed as (in_features, out_features), biases as (1, out_features)."""
    ks = jax.random.split(key, 4)

    def linear(kw, kb, fan_in, fan_out):
        bound = 1.0 / jnp.sqrt(fan_in)
        w = jax.random.uniform(kw, (fan_in, fan_out), jnp.float32, -bound, bound)
        b = jax.random.uniform(kb, (1, fan_out), jnp.float32, -bound, bound)
        return w, b

    w1, b1 = linear(ks[0], ks[1], dim, hidden_dim)
    w2, b2 = linear(ks[2], ks[3], hidden_dim, dim)
    return {"w1": w1, "b1": b1, "w2": w2, "b2": b2}


def reference_forward(x, p):
    # f32 reference (same tanh-approx GELU as the kernel).
    c = 0.7978845608028654
    h = x @ p["w1"] + p["b1"]
    h = 0.5 * h * (1.0 + jnp.tanh(c * (h + 0.044715 * h * h * h)))
    return h @ p["w2"] + p["b2"]


if __name__ == "__main__":
    key = jax.random.PRNGKey(0)
    k_param, k_x = jax.random.split(key)

    batch, seq, dim, hidden_dim = 2, 8, 64, 128

    params = init_params(k_param, dim, hidden_dim)
    x = jax.random.normal(k_x, (batch, seq, dim), jnp.float32)

    out = feedforward_forward(x, params)
    out = jax.block_until_ready(out)

    ref = reference_forward(x, params)
    assert out.shape == (batch, seq, dim)
    # bf16 MXU operands -> ~1e-2-level tolerance vs the pure-f32 reference.
    assert jnp.allclose(out, ref, atol=2e-2, rtol=2e-2), "mismatch vs reference"

    print("KERNEL_OK")
</pallas_src>

<mosaic_0001>
module attributes {stable_mosaic.version = 11 : i64} {
  func.func @ffn_kernel(%arg0: i32, %arg1: memref<16x64xbf16, #tpu.memory_space<vmem>>, %arg2: memref<64x128xbf16, #tpu.memory_space<vmem>>, %arg3: memref<1x128xf32, #tpu.memory_space<vmem>>, %arg4: memref<128x128xbf16, #tpu.memory_space<vmem>>, %arg5: memref<1x128xf32, #tpu.memory_space<vmem>>, %arg6: memref<16x128xf32, #tpu.memory_space<vmem>>) attributes {dimension_semantics = [#tpu.dimension_semantics<parallel>], iteration_bounds = array<i64: 1>, scalar_prefetch = 0 : i64, scratch_operands = 0 : i64, tpu.core_type = #tpu.core_type<tc>, window_params = [{transform_indices = @transform_0, window_bounds = array<i64: 16, 64>}, {pipeline_mode = #tpu.pipeline_mode<synchronous>, transform_indices = @transform_1, window_bounds = array<i64: 64, 128>}, {pipeline_mode = #tpu.pipeline_mode<synchronous>, transform_indices = @transform_2, window_bounds = array<i64: 1, 128>}, {pipeline_mode = #tpu.pipeline_mode<synchronous>, transform_indices = @transform_3, window_bounds = array<i64: 128, 128>}, {pipeline_mode = #tpu.pipeline_mode<synchronous>, transform_indices = @transform_4, window_bounds = array<i64: 1, 128>}, {transform_indices = @transform_5, window_bounds = array<i64: 16, 128>}]} {
    %c0 = arith.constant 0 : index
    %c0_0 = arith.constant 0 : index
    %0 = vector.load %arg1[%c0, %c0_0] : memref<16x64xbf16, #tpu.memory_space<vmem>>, vector<16x64xbf16>
    %c0_1 = arith.constant 0 : index
    %c0_2 = arith.constant 0 : index
    %1 = vector.load %arg2[%c0_1, %c0_2] : memref<64x128xbf16, #tpu.memory_space<vmem>>, vector<64x128xbf16>
    %cst = arith.constant dense<0.000000e+00> : vector<16x128xf32>
    %2 = tpu.matmul %0, %1, %cst {dimension_numbers = #tpu.dot_dimension_numbers<[1], [0], [0], [1], [0, 0, 1, 1], [], []>} : vector<16x64xbf16>, vector<64x128xbf16>, vector<16x128xf32> -> vector<16x128xf32>
    %c0_3 = arith.constant 0 : index
    %c0_4 = arith.constant 0 : index
    %3 = vector.load %arg3[%c0_3, %c0_4] : memref<1x128xf32, #tpu.memory_space<vmem>>, vector<1x128xf32>
    %4 = vector.broadcast %3 : vector<1x128xf32> to vector<16x128xf32>
    %5 = arith.addf %2, %4 : vector<16x128xf32>
    %cst_5 = arith.constant 5.000000e-01 : f32
    %6 = vector.broadcast %cst_5 : f32 to vector<16x128xf32>
    %7 = arith.mulf %6, %5 : vector<16x128xf32>
    %cst_6 = arith.constant 4.471500e-02 : f32
    %8 = vector.broadcast %cst_6 : f32 to vector<16x128xf32>
    %9 = arith.mulf %8, %5 : vector<16x128xf32>
    %10 = arith.mulf %9, %5 : vector<16x128xf32>
    %11 = arith.mulf %10, %5 : vector<16x128xf32>
    %12 = arith.addf %5, %11 : vector<16x128xf32>
    %cst_7 = arith.constant 0.797884583 : f32
    %13 = vector.broadcast %cst_7 : f32 to vector<16x128xf32>
    %14 = arith.mulf %13, %12 : vector<16x128xf32>
    %15 = math.tanh %14 : vector<16x128xf32>
    %cst_8 = arith.constant 1.000000e+00 : f32
    %16 = vector.broadcast %cst_8 : f32 to vector<16x128xf32>
    %17 = arith.addf %16, %15 : vector<16x128xf32>
    %18 = arith.mulf %7, %17 : vector<16x128xf32>
    %19 = arith.truncf %18 : vector<16x128xf32> to vector<16x128xbf16>
    %c0_9 = arith.constant 0 : index
    %c0_10 = arith.constant 0 : index
    %20 = vector.load %arg4[%c0_9, %c0_10] : memref<128x128xbf16, #tpu.memory_space<vmem>>, vector<128x128xbf16>
    %cst_11 = arith.constant dense<0.000000e+00> : vector<16x128xf32>
    %21 = tpu.matmul %19, %20, %cst_11 {dimension_numbers = #tpu.dot_dimension_numbers<[1], [0], [0], [1], [0, 0, 1, 1], [], []>} : vector<16x128xbf16>, vector<128x128xbf16>, vector<16x128xf32> -> vector<16x128xf32>
    %c0_12 = arith.constant 0 : index
    %c0_13 = arith.constant 0 : index
    %22 = vector.load %arg5[%c0_12, %c0_13] : memref<1x128xf32, #tpu.memory_space<vmem>>, vector<1x128xf32>
    %23 = vector.broadcast %22 : vector<1x128xf32> to vector<16x128xf32>
    %24 = arith.addf %21, %23 : vector<16x128xf32>
    %c0_14 = arith.constant 0 : index
    %c0_15 = arith.constant 0 : index
    %25 = vector.load %arg6[%c0_14, %c0_15] : memref<16x128xf32, #tpu.memory_space<vmem>>, vector<16x128xf32>
    tpu.vector_store %arg6[%c0_14, %c0_15], %24 {strides = array<i32>} : memref<16x128xf32, #tpu.memory_space<vmem>>, vector<16x128xf32>,
    return
  }
  func.func @transform_0(%arg0: i32) -> (i32, i32) {
    %c0_i32 = arith.constant 0 : i32
    %c0_i32_0 = arith.constant 0 : i32
    return %arg0, %c0_i32 : i32, i32
  }
  func.func @transform_1(%arg0: i32) -> (i32, i32) {
    %c0_i32 = arith.constant 0 : i32
    %c0_i32_0 = arith.constant 0 : i32
    %c0_i32_1 = arith.constant 0 : i32
    return %c0_i32, %c0_i32_0 : i32, i32
  }
  func.func @transform_2(%arg0: i32) -> (i32, i32) {
    %c0_i32 = arith.constant 0 : i32
    %c0_i32_0 = arith.constant 0 : i32
    %c0_i32_1 = arith.constant 0 : i32
    return %c0_i32, %c0_i32_0 : i32, i32
  }
  func.func @transform_3(%arg0: i32) -> (i32, i32) {
    %c0_i32 = arith.constant 0 : i32
    %c0_i32_0 = arith.constant 0 : i32
    %c0_i32_1 = arith.constant 0 : i32
    return %c0_i32, %c0_i32_0 : i32, i32
  }
  func.func @transform_4(%arg0: i32) -> (i32, i32) {
    %c0_i32 = arith.constant 0 : i32
    %c0_i32_0 = arith.constant 0 : i32
    %c0_i32_1 = arith.constant 0 : i32
    return %c0_i32, %c0_i32_0 : i32, i32
  }
  func.func @transform_5(%arg0: i32) -> (i32, i32) {
    %c0_i32 = arith.constant 0 : i32
    %c0_i32_0 = arith.constant 0 : i32
    return %arg0, %c0_i32 : i32, i32
  }
}

</mosaic_0001>

<bundles_post_ra>
// kernel: tpu_custom_call.1
= control target key start
LH: loop header
LB: loop body
LE: loop exit
PB: predicated region body
PF: predicated region fallthrough
CT: control target
= control target key end

     0   :  { %10 = vsyncpa [#allocation3], 0  ;;  %s538_s0 = inlined_call_operand.hbm [shape: bf16[16,64], index: 0, kind: input, shape index: {}]   ;;  %s539_s1 = inlined_call_operand.hbm [shape: bf16[64,128], index: 1, kind: input, shape index: {}]   ;;  %s540_s2 = inlined_call_operand.vmem [shape: f32[1,128], index: 2, kind: input, shape index: {}]   ;;  %s541_s3 = inlined_call_operand.hbm [shape: bf16[128,128], index: 3, kind: input, shape index: {}]   ;;  %s542_s4 = inlined_call_operand.vmem [shape: f32[1,128], index: 4, kind: input, shape index: {}]   ;;  %s543_s5 = inlined_call_operand.hbm [shape: f32[16,128], index: 5, kind: output, shape index: {}]  }
   0x1   :  { %11 = vsyncpa [#allocation6], 0 }
   0x2   :  { %12 = vsyncpa [#allocation4], 0  ;;  %s480_s18 = smov [#allocation5]   ;;  %s481_s20 = smov [#allocation2]  }
   0x3   :  { %s30_s19 = sshll.u32 %s480_s18, 4  ;;  %s18_s21 = sshll.u32 %s481_s20, 4  ;;  %s31_s19 = int_to_ptr.vmem [resolvable:$true] %s30_s19  ;;  %s19_s21 = int_to_ptr.vmem [resolvable:$true] %s18_s21 }
   0x4   :  { %s402_s22 = scalar_lea.vmem %s31_s19, 512  ;;  %p407_p1 = scmp.lt.s32.totalorder %s31_s19, %s31_s19 }
   0x5   :  { %p403_p0 = scmp.ne.s32.totalorder %s31_s19, %s402_s22  ;;  %p408_p2 = scmp.lt.s32.totalorder %s402_s22, %s402_s22 }
   0x7   :  { %p409_p3 = por %p408_p2, %p407_p1 }
   0x9   :  { %p410_p4 = pnand %p409_p3, %p403_p0 }
   0xb   :  { %413 = shalt.err (!%p410_p4)
}
   0xc   :  { %s482_s23 = smov 64   ;;  %s483_s24 = smov 4  }
   0xd   :  { %36 = dma.hbm_to_vmem [thread:$0]  %s539_s1, 512, %s31_s19, [#allocation6], %s482_s23, %s482_s23, %s483_s24  }
   0xe   :  { %s422_s27 = scalar_lea.vmem %s19_s21, 128  ;;  %p427_p6 = scmp.lt.s32.totalorder %s19_s21, %s19_s21 }
   0xf   :  { %p423_p5 = scmp.ne.s32.totalorder %s19_s21, %s422_s27  ;;  %p428_p7 = scmp.lt.s32.totalorder %s422_s27, %s422_s27 }
  0x11   :  { %p429_p8 = por %p428_p7, %p427_p6 }
  0x13   :  { %p430_p9 = pnand %p429_p8, %p423_p5 }
  0x15   :  { %433 = shalt.err (!%p430_p9)
}
  0x16   :  { %24 = dma.hbm_to_vmem [thread:$0]  %s538_s0, 128, %s19_s21, [#allocation3], %s482_s23, %s482_s23, %s483_s24  }
  0x17   :  { %s484_s30 = smov [#allocation7]  }
  0x18   :  { %s44_s6 = sshll.u32 %s484_s30, 4  ;;  %s45_s6 = int_to_ptr.vmem [resolvable:$true] %s44_s6 }
  0x19   :  { %s442_s7 = scalar_lea.vmem %s45_s6, 1024  ;;  %p447_p11 = scmp.lt.s32.totalorder %s45_s6, %s45_s6 }
  0x1a   :  { %p443_p10 = scmp.ne.s32.totalorder %s45_s6, %s442_s7  ;;  %p448_p12 = scmp.lt.s32.totalorder %s442_s7, %s442_s7 }
  0x1c   :  { %p449_p13 = por %p448_p12, %p447_p11 }
  0x1e   :  { %p450_p0 = pnand %p449_p13, %p443_p10 }
  0x20   :  { %453 = shalt.err (!%p450_p0)
}
  0x21   :  { %50 = dma.hbm_to_vmem [thread:$0]  %s541_s3, 1024, %s45_s6, [#allocation6], %s482_s23, %s482_s23, %s483_s24  }
  0x22   :  { %474 = dma.done.wait [#allocation3], 128  }
  0x23   :  { %475 = vsyncadd [#allocation3], 4294967168 }
  0x24   :  { %476 = dma.done.wait [#allocation6], 1536  }
  0x25   :  { %477 = vsyncadd [#allocation6], 4294965760  ;;  %v485_v0 = vmov 0.0   ;;  %vm486_vm0 = vmmov 0   ;;  %v377_v1 = vld [vmem:[#allocation5 + $0x18] sm:$0xff]   ;;  %v378_v2 = vld [vmem:[#allocation5 + $0x10] sm:$0xff]  }
  0x26   :  { %335 = vmatprep.subr.bf16.mxu0 %v485_v0  ;;  %343 = vmatprep.mubr.msk.bf16.mxu0 %vm486_vm0, %v485_v0  ;;  %v379_v3 = vld [vmem:[#allocation5 + $0x8] sm:$0xff]   ;;  %v380_v4 = vld [vmem:[#allocation5] sm:$0xff]   ;;  %v381_v5 = vld [vmem:[#allocation2] sm:$0xff]   ;;  %vm109_vm1 = vcmask 523264   ;;  %s487_s10 = smov [#allocation8]  }
  0x27   :  { %347 = vmatprep.subr.bf16.mxu1 %v485_v0  ;;  %363 = vmatprep.mubr.msk.bf16.mxu1 %vm486_vm0, %v485_v0  ;;  %v382_v6 = vld [vmem:[#allocation7 + $0x38] sm:$0xff]   ;;  %v383_v7 = vld [vmem:[#allocation7 + $0x30] sm:$0xff]   ;;  %v384_v8 = vld [vmem:[#allocation7 + $0x28] sm:$0xff]   ;;  %s292_s11 = sshll.u32 %s487_s10, 4  ;;  %s293_s11 = int_to_ptr.vmem [resolvable:$true] %s292_s11 }
  0x28   :  { %336 = vmatpush3.bf16.msra.mxu0 %v377_v1  ;;  %348 = vmatpush3.bf16.msra.mxu1 %v382_v6  ;;  %v385_v9 = vld [vmem:[#allocation7 + $0x20] sm:$0xff]   ;;  %v386_v10 = vld [vmem:[#allocation7 + $0x18] sm:$0xff]   ;;  %v387_v11 = vld [vmem:[#allocation7 + $0x10] sm:$0xff]   ;;  %s454_s12 = scalar_lea.vmem %s293_s11, 256  ;;  %p459_p2 = scmp.lt.s32.totalorder %s293_s11, %s293_s11 }
  0x29   :  { %337 = vmatprep.subr.bf16.mxu0 %v485_v0  ;;  %349 = vmatprep.subr.bf16.mxu1 %v485_v0  ;;  %v388_v12 = vld [vmem:[#allocation7 + $0x8] sm:$0xff]   ;;  %v389_v13 = vld [vmem:[#allocation7] sm:$0xff]   ;;  %v305_v14 = vld [vmem:[%s540_s2] ss:$0 sm:$0xff]  ;;  %p455_p1 = scmp.ne.s32.totalorder %s293_s11, %s454_s12  ;;  %p460_p3 = scmp.lt.s32.totalorder %s454_s12, %s454_s12 }
  0x2a   :  { %v312_v40 = vld [vmem:[%s542_s4] ss:$0 sm:$0xff] }
  0x2b   :  { %p461_p4 = por %p460_p3, %p459_p2 }
  0x2c   :  { %338 = vmatpush3.bf16.msra.mxu0 %v378_v2  ;;  %350 = vmatpush3.bf16.msra.mxu1 %v383_v7 }
  0x2d   :  { %339 = vmatprep.subr.bf16.mxu0 %v485_v0  ;;  %351 = vmatprep.subr.bf16.mxu1 %v485_v0  ;;  %p462_p5 = pnand %p461_p4, %p455_p1 }
  0x30   :  { %340 = vmatpush3.bf16.msra.mxu0 %v379_v3  ;;  %352 = vmatpush3.bf16.msra.mxu1 %v384_v8 }
  0x31   :  { %341 = vmatprep.subr.bf16.mxu0 %v485_v0  ;;  %353 = vmatprep.subr.bf16.mxu1 %v485_v0 }
  0x34   :  { %342 = vmatpush3.bf16.msra.mxu0 %v380_v4  ;;  %354 = vmatpush3.bf16.msra.mxu1 %v385_v9 }
  0x35   :  { %355 = vmatprep.subr.bf16.mxu1 %v485_v0 }
  0x37   :  { %344 = vmatmul.mubr.msk.bf16.vlgmr.msra.gmra.mxu0 %vm109_vm1, %v381_v5 }
  0x38   :  { %356 = vmatpush3.bf16.msra.mxu1 %v386_v10 }
  0x39   :  { %357 = vmatprep.subr.bf16.mxu1 %v485_v0 }
  0x3c   :  { %358 = vmatpush3.bf16.msra.mxu1 %v387_v11 }
  0x3d   :  { %359 = vmatprep.subr.bf16.mxu1 %v485_v0 }
  0x40   :  { %360 = vmatpush3.bf16.msra.mxu1 %v388_v12 }
  0x41   :  { %361 = vmatprep.subr.bf16.mxu1 %v485_v0 }
  0x44   :  { %362 = vmatpush3.bf16.msra.mxu1 %v389_v13 }
  0xf7   :  { %v147_v15 = vpop.f32.mrf.mxu0 }
  0xf8   :  { %v148_v16 = vadd.f32 %v305_v14, %v147_v15 }
  0xf9   :  { %v345_v17 = vpop.f32.mrf.mxu0 }
  0xfa   :  { %v156_v18 = vmul.f32 0.044715, %v148_v16  ;;  %v154_v34 = vmul.f32 0.5, %v148_v16 }
  0xfb   :  { %v150_v19 = vpop.f32.mrf.mxu0 }
  0xfc   :  { %v158_v20 = vmul.f32 %v156_v18, %v148_v16  ;;  %v151_v21 = vadd.f32 %v305_v14, %v150_v19 }
  0xfd   :  { %v346_v22 = vpop.f32.mrf.mxu0 }
  0xfe   :  { %v160_v23 = vmul.f32 %v158_v20, %v148_v16  ;;  %v157_v24 = vmul.f32 0.044715, %v151_v21  ;;  %v155_v35 = vmul.f32 0.5, %v151_v21 }
 0x100   :  { %v159_v25 = vmul.f32 %v157_v24, %v151_v21  ;;  %v162_v26 = vadd.f32 %v160_v23, %v148_v16 }
 0x102   :  { %v161_v27 = vmul.f32 %v159_v25, %v151_v21  ;;  %v164_v28 = vmul.f32 0.7978846, %v162_v26 }
 0x104   :  { %v163_v29 = vadd.f32 %v161_v27, %v151_v21  ;;  %390 = vtanh.f32 %v164_v28 }
 0x106   :  { %v165_v30 = vmul.f32 0.7978846, %v163_v29 }
 0x108   :  { %392 = vtanh.f32 %v165_v30 }
 0x111   :  { %v391_v31 = vpop.eup %390 }
 0x112   :  { %v168_v32 = vadd.f32 1.0, %v391_v31 }
 0x114   :  { %v170_v37 = vmul.f32 %v168_v32, %v154_v34 }
 0x115   :  { %v393_v33 = vpop.eup %392 }
 0x116   :  { %v169_v36 = vadd.f32 1.0, %v393_v33 }
 0x118   :  { %v171_v38 = vmul.f32 %v169_v36, %v155_v35 }
 0x11a   :  { %v172_v39 = vpack.c.bf16 %v171_v38, %v170_v37 }
 0x11c   :  { %364 = vmatmul.mubr.bf16.vlgmr.msra.gmra.mxu1 %v172_v39 }
 0x1dc   :  { %v278_v41 = vpop.f32.mrf.mxu1 }
 0x1dd   :  { %v279_v42 = vadd.f32 %v312_v40, %v278_v41 }
 0x1de   :  { %v365_v43 = vpop.f32.mrf.mxu1 }
 0x1df   :  { %285 = vst [vmem:[#allocation8] sm:$0xff] %v279_v42 }
 0x1e0   :  { %v281_v44 = vpop.f32.mrf.mxu1 }
 0x1e1   :  { %v282_v45 = vadd.f32 %v312_v40, %v281_v44 }
 0x1e2   :  { %v366_v46 = vpop.f32.mrf.mxu1 }
 0x1e3   :  { %286 = vst [vmem:[#allocation8 + $0x8] sm:$0xff] %v282_v45 }
 0x1e4   :  { %465 = shalt.err (!%p462_p5)
}
 0x1e5   :  { %s488_s13 = smov 128   ;;  %s489_s4 = smov 8  }
 0x1e6   :  { %298 = dma.vmem_to_hbm [thread:$0]  %s293_s11, 256, %s543_s5, [#allocation4], %s488_s13, %s488_s13, %s489_s4  }
 0x1e7   :  { %478 = dma.done.wait [#allocation4], 256  }
 0x1e8   :  { %479 = vsyncadd [#allocation4], 4294967040 }
 0x1e9   :  { %302 = vsyncpa [#allocation3], 1 }
 0x1ea   :  { %303 = vsyncpa [#allocation6], 1 }
 0x1eb   :  { %304 = vsyncpa [#allocation4], 1 }

</bundles_post_ra>
